<compile_context>
chip_gen: v7x
topology: tpu7x:2x2x1
jax: 0.10.0
libtpu: 0.0.40
codegen_flags: <defaults>
</compile_context>

<pallas_src>
import numpy as np

import jax
import jax.numpy as jnp
from jax.experimental import pallas as pl
from jax.experimental.pallas import tpu as pltpu


def _round_up(x, n):
    return ((x + n - 1) // n) * n


def _pick_batch_tile(B, tm_max=4096):
    """Batch tile: as large as possible (per-row work is tiny, the ~0.35 us
    per-grid-step overhead dominates), a multiple of 8 so partial last blocks
    are legal, and >= 2 grid steps when the batch allows it (v7x megacore)."""
    if B < 16:
        return B                                     # single block == full array dim
    tm = min(tm_max, _round_up(B, 8))
    tm = min(tm, _round_up(pl.cdiv(B, 2), 8))        # >= 2 grid steps for megacore
    return max(tm, 8)


def _softmax_epilogue_mats(m, w):
    """0/1 matrices for the grouped-softmax epilogue (kept VMEM-resident).

    sel: (m*(w+1), m*w)  drop-last-column selector (each column has one 1).
    grp: (m*(w+1), m*w)  block-diagonal group-sum/broadcast matrix.
    """
    wp1 = w + 1
    sel = np.zeros((m * wp1, m * w), np.float32)
    grp = np.zeros((m * wp1, m * w), np.float32)
    for g in range(m):
        for k in range(w):
            sel[g * wp1 + k, g * w + k] = 1.0
        grp[g * wp1:(g + 1) * wp1, g * w:(g + 1) * w] = 1.0
    return jnp.asarray(sel), jnp.asarray(grp)


# ---------------- fused Pallas kernel ----------------

def fused_vanilla_kernel(x_ref,
                         w1_ref, b1_ref, w2_ref, b2_ref, w3_ref, b3_ref,
                         sel_ref, grp_ref, o_ref):
    """3-layer MLP + grouped softmax + drop-last-column, one batch tile."""
    # Layer 1: single K~=68 MXU pass.
    h1 = jnp.dot(x_ref[...], w1_ref[...],
                 preferred_element_type=jnp.float32) + b1_ref[...]
    h1 = jnp.maximum(h1, 0.0)

    h2 = jnp.dot(h1, w2_ref[...],
                 preferred_element_type=jnp.float32) + b2_ref[...]
    h2 = jnp.maximum(h2, 0.0)

    # (tm, m*(w+1)) logits.
    z = jnp.dot(h2, w3_ref[...],
                preferred_element_type=jnp.float32) + b3_ref[...]

    # Grouped softmax over each (w+1)-wide group + drop last column of each
    # group, with no lane slicing / concatenation:
    #   * subtract a row-global max (softmax is shift-invariant per group),
    #   * group sums and the column selection go through the otherwise-idle
    #     MXU against small VMEM-resident 0/1 matrices.
    zmax = jnp.max(z, axis=-1, keepdims=True)
    e = jnp.exp(z - zmax)                                               # (tm, m*(w+1))
    num = jnp.dot(e, sel_ref[...], preferred_element_type=jnp.float32)  # (tm, m*w)
    den = jnp.dot(e, grp_ref[...], preferred_element_type=jnp.float32)  # (tm, m*w)
    o_ref[...] = num * pl.reciprocal(den, approx=False)                 # exact (1e-5 tol)


# ---------------- wrapper ----------------

def vanilla_forward(args, params, m, w, *, tm_max=4096):
    # unpack_and_concat_args: flatten from dim=1 and lane-concatenate.
    keys = ('w_preferences', 'm_preferences', 'current_matching',
            'current_proposal_matrix')
    x = jnp.concatenate(
        [args[k].reshape(args[k].shape[0], -1) for k in keys],
        axis=1).astype(jnp.float32)                                     # (B, d_in)
    B, d_in = x.shape
    h1 = params['w1'].shape[1]
    h2 = params['w2'].shape[1]
    cols_full = m * (w + 1)
    cols_out = m * w

    sel, grp = _softmax_epilogue_mats(m, w)

    tm = _pick_batch_tile(B, tm_max)
    grid = (pl.cdiv(B, tm),)        # no batch pad: partial last block is write-masked

    def row_spec(d):
        return pl.BlockSpec((tm, d), lambda i: (i, 0))

    def resident(arr):
        # Constant block index -> fetched once, stays VMEM-resident across steps.
        return pl.BlockSpec(arr.shape, lambda i: (0, 0))

    weight_args = (params['w1'], params['b1'], params['w2'], params['b2'],
                   params['w3'], params['b3'], sel, grp)

    cost = pl.CostEstimate(
        flops=2 * B * (d_in * h1 + h1 * h2 + h2 * cols_full
                       + 2 * cols_full * cols_out),
        transcendentals=B * cols_full,
        bytes_accessed=4 * (B * (d_in + cols_out)
                            + d_in * h1 + h1 * h2 + h2 * cols_full
                            + h1 + h2 + cols_full
                            + 2 * cols_full * cols_out),
    )

    out = pl.pallas_call(
        fused_vanilla_kernel,
        out_shape=jax.ShapeDtypeStruct((B, cols_out), jnp.float32),
        grid=grid,
        in_specs=[row_spec(d_in)] + [resident(a) for a in weight_args],
        out_specs=row_spec(cols_out),
        compiler_params=pltpu.CompilerParams(
            dimension_semantics=("parallel",),          # shard batch across TCs (v7x)
            vmem_limit_bytes=32 * 1024 * 1024),
        cost_estimate=cost,
    )(x, *weight_args)

    return out.reshape(B, m, w)       # == softmax(z.reshape(-1, m, w+1))[:, :, :-1]

# TODO(synk): optional lane-dense (B//8, 128) output repack and bf16 activation
# path were left out to keep exact-f32 semantics and guaranteed lowering.


# ---------------- deterministic parameter init ----------------

def init_params(key, m, w, h1, h2):
    d_in = (w * m) + (m * w) + (m * (w + 1)) + (m * w)
    out_dim = m * (w + 1)

    k1, k2, k3, k4, k5, k6 = jax.random.split(key, 6)
    s1 = 1.0 / jnp.sqrt(d_in)
    s2 = 1.0 / jnp.sqrt(h1)
    s3 = 1.0 / jnp.sqrt(h2)
    return {
        'w1': jax.random.uniform(k1, (d_in, h1), jnp.float32, -s1, s1),
        'b1': jax.random.uniform(k2, (1, h1), jnp.float32, -s1, s1),
        'w2': jax.random.uniform(k3, (h1, h2), jnp.float32, -s2, s2),
        'b2': jax.random.uniform(k4, (1, h2), jnp.float32, -s2, s2),
        'w3': jax.random.uniform(k5, (h2, out_dim), jnp.float32, -s3, s3),
        'b3': jax.random.uniform(k6, (1, out_dim), jnp.float32, -s3, s3),
    }


# ---------------- pure-JAX reference ----------------

def vanilla_reference(args, params, m, w):
    keys = ('w_preferences', 'm_preferences', 'current_matching',
            'current_proposal_matrix')
    x = jnp.concatenate([args[k].reshape(args[k].shape[0], -1) for k in keys],
                        axis=1).astype(jnp.float32)
    h1 = jnp.maximum(x @ params['w1'] + params['b1'], 0.0)
    h2 = jnp.maximum(h1 @ params['w2'] + params['b2'], 0.0)
    z = (h2 @ params['w3'] + params['b3']).reshape(-1, m, w + 1)
    p = jax.nn.softmax(z, axis=2)
    return p[:, :, :-1]


if __name__ == "__main__":
    B, m, w = 2, 4, 4            # 4 "men", 4 "women"
    hidden = 32

    key = jax.random.PRNGKey(0)
    kw, km, kc, kp, kparam = jax.random.split(key, 5)

    args = {
        'w_preferences':            jax.random.uniform(kw, (B, w, m), jnp.float32),
        'm_preferences':            jax.random.uniform(km, (B, m, w), jnp.float32),
        'current_matching':         jax.random.uniform(kc, (B, m, w + 1), jnp.float32),
        'current_proposal_matrix':  jax.random.uniform(kp, (B, m, w), jnp.float32),
    }

    params = init_params(kparam, m, w, hidden, hidden)

    out = vanilla_forward(args, params, m, w)
    out = jax.block_until_ready(out)

    ref = vanilla_reference(args, params, m, w)
    assert out.shape == (B, m, w), out.shape
    assert jnp.allclose(out, ref, atol=1e-5, rtol=1e-5), \
        float(jnp.max(jnp.abs(out - ref)))

    print("KERNEL_OK")
</pallas_src>

<mosaic_0001>
module attributes {stable_mosaic.version = 11 : i64} {
  func.func @fused_vanilla_kernel(%arg0: i32, %arg1: memref<2x68xf32, #tpu.memory_space<vmem>>, %arg2: memref<68x32xf32, #tpu.memory_space<vmem>>, %arg3: memref<1x32xf32, #tpu.memory_space<vmem>>, %arg4: memref<32x32xf32, #tpu.memory_space<vmem>>, %arg5: memref<1x32xf32, #tpu.memory_space<vmem>>, %arg6: memref<32x20xf32, #tpu.memory_space<vmem>>, %arg7: memref<1x20xf32, #tpu.memory_space<vmem>>, %arg8: memref<20x16xf32, #tpu.memory_space<vmem>>, %arg9: memref<20x16xf32, #tpu.memory_space<vmem>>, %arg10: memref<2x16xf32, #tpu.memory_space<vmem>>) attributes {dimension_semantics = [#tpu.dimension_semantics<parallel>], iteration_bounds = array<i64: 1>, scalar_prefetch = 0 : i64, scratch_operands = 0 : i64, tpu.core_type = #tpu.core_type<tc>, window_params = [{transform_indices = @transform_0, window_bounds = array<i64: 2, 68>}, {pipeline_mode = #tpu.pipeline_mode<synchronous>, transform_indices = @transform_1, window_bounds = array<i64: 68, 32>}, {pipeline_mode = #tpu.pipeline_mode<synchronous>, transform_indices = @transform_2, window_bounds = array<i64: 1, 32>}, {pipeline_mode = #tpu.pipeline_mode<synchronous>, transform_indices = @transform_3, window_bounds = array<i64: 32, 32>}, {pipeline_mode = #tpu.pipeline_mode<synchronous>, transform_indices = @transform_4, window_bounds = array<i64: 1, 32>}, {pipeline_mode = #tpu.pipeline_mode<synchronous>, transform_indices = @transform_5, window_bounds = array<i64: 32, 20>}, {pipeline_mode = #tpu.pipeline_mode<synchronous>, transform_indices = @transform_6, window_bounds = array<i64: 1, 20>}, {pipeline_mode = #tpu.pipeline_mode<synchronous>, transform_indices = @transform_7, window_bounds = array<i64: 20, 16>}, {pipeline_mode = #tpu.pipeline_mode<synchronous>, transform_indices = @transform_8, window_bounds = array<i64: 20, 16>}, {transform_indices = @transform_9, window_bounds = array<i64: 2, 16>}]} {
    %c0 = arith.constant 0 : index
    %c0_0 = arith.constant 0 : index
    %0 = vector.load %arg1[%c0, %c0_0] : memref<2x68xf32, #tpu.memory_space<vmem>>, vector<2x68xf32>
    %c0_1 = arith.constant 0 : index
    %c0_2 = arith.constant 0 : index
    %1 = vector.load %arg2[%c0_1, %c0_2] : memref<68x32xf32, #tpu.memory_space<vmem>>, vector<68x32xf32>
    %cst = arith.constant dense<0.000000e+00> : vector<2x32xf32>
    %2 = tpu.matmul %0, %1, %cst {dimension_numbers = #tpu.dot_dimension_numbers<[1], [0], [0], [1], [0, 0, 1, 1], [], []>} : vector<2x68xf32>, vector<68x32xf32>, vector<2x32xf32> -> vector<2x32xf32>
    %c0_3 = arith.constant 0 : index
    %c0_4 = arith.constant 0 : index
    %3 = vector.load %arg3[%c0_3, %c0_4] : memref<1x32xf32, #tpu.memory_space<vmem>>, vector<1x32xf32>
    %4 = vector.broadcast %3 : vector<1x32xf32> to vector<2x32xf32>
    %5 = arith.addf %2, %4 : vector<2x32xf32>
    %cst_5 = arith.constant 0.000000e+00 : f32
    %6 = vector.broadcast %cst_5 : f32 to vector<2x32xf32>
    %7 = arith.maximumf %5, %6 : vector<2x32xf32>
    %c0_6 = arith.constant 0 : index
    %c0_7 = arith.constant 0 : index
    %8 = vector.load %arg4[%c0_6, %c0_7] : memref<32x32xf32, #tpu.memory_space<vmem>>, vector<32x32xf32>
    %cst_8 = arith.constant dense<0.000000e+00> : vector<2x32xf32>
    %9 = tpu.matmul %7, %8, %cst_8 {dimension_numbers = #tpu.dot_dimension_numbers<[1], [0], [0], [1], [0, 0, 1, 1], [], []>} : vector<2x32xf32>, vector<32x32xf32>, vector<2x32xf32> -> vector<2x32xf32>
    %c0_9 = arith.constant 0 : index
    %c0_10 = arith.constant 0 : index
    %10 = vector.load %arg5[%c0_9, %c0_10] : memref<1x32xf32, #tpu.memory_space<vmem>>, vector<1x32xf32>
    %11 = vector.broadcast %10 : vector<1x32xf32> to vector<2x32xf32>
    %12 = arith.addf %9, %11 : vector<2x32xf32>
    %cst_11 = arith.constant 0.000000e+00 : f32
    %13 = vector.broadcast %cst_11 : f32 to vector<2x32xf32>
    %14 = arith.maximumf %12, %13 : vector<2x32xf32>
    %c0_12 = arith.constant 0 : index
    %c0_13 = arith.constant 0 : index
    %15 = vector.load %arg6[%c0_12, %c0_13] : memref<32x20xf32, #tpu.memory_space<vmem>>, vector<32x20xf32>
    %cst_14 = arith.constant dense<0.000000e+00> : vector<2x20xf32>
    %16 = tpu.matmul %14, %15, %cst_14 {dimension_numbers = #tpu.dot_dimension_numbers<[1], [0], [0], [1], [0, 0, 1, 1], [], []>} : vector<2x32xf32>, vector<32x20xf32>, vector<2x20xf32> -> vector<2x20xf32>
    %c0_15 = arith.constant 0 : index
    %c0_16 = arith.constant 0 : index
    %17 = vector.load %arg7[%c0_15, %c0_16] : memref<1x20xf32, #tpu.memory_space<vmem>>, vector<1x20xf32>
    %18 = vector.broadcast %17 : vector<1x20xf32> to vector<2x20xf32>
    %19 = arith.addf %16, %18 : vector<2x20xf32>
    %cst_17 = arith.constant dense<0xFF800000> : vector<2xf32>
    %20 = vector.multi_reduction <maximumf>, %19, %cst_17 [1] : vector<2x20xf32> to vector<2xf32>
    %21 = vector.shape_cast %20 : vector<2xf32> to vector<2x1xf32>
    %22 = vector.broadcast %21 : vector<2x1xf32> to vector<2x20xf32>
    %23 = arith.subf %19, %22 : vector<2x20xf32>
    %24 = math.exp %23 : vector<2x20xf32>
    %c0_18 = arith.constant 0 : index
    %c0_19 = arith.constant 0 : index
    %25 = vector.load %arg8[%c0_18, %c0_19] : memref<20x16xf32, #tpu.memory_space<vmem>>, vector<20x16xf32>
    %cst_20 = arith.constant dense<0.000000e+00> : vector<2x16xf32>
    %26 = tpu.matmul %24, %25, %cst_20 {dimension_numbers = #tpu.dot_dimension_numbers<[1], [0], [0], [1], [0, 0, 1, 1], [], []>} : vector<2x20xf32>, vector<20x16xf32>, vector<2x16xf32> -> vector<2x16xf32>
    %c0_21 = arith.constant 0 : index
    %c0_22 = arith.constant 0 : index
    %27 = vector.load %arg9[%c0_21, %c0_22] : memref<20x16xf32, #tpu.memory_space<vmem>>, vector<20x16xf32>
    %cst_23 = arith.constant dense<0.000000e+00> : vector<2x16xf32>
    %28 = tpu.matmul %24, %27, %cst_23 {dimension_numbers = #tpu.dot_dimension_numbers<[1], [0], [0], [1], [0, 0, 1, 1], [], []>} : vector<2x20xf32>, vector<20x16xf32>, vector<2x16xf32> -> vector<2x16xf32>
    %29 = tpu.reciprocal %28 : vector<2x16xf32> -> vector<2x16xf32>
    %30 = arith.mulf %26, %29 : vector<2x16xf32>
    %c0_24 = arith.constant 0 : index
    %c0_25 = arith.constant 0 : index
    %31 = vector.load %arg10[%c0_24, %c0_25] : memref<2x16xf32, #tpu.memory_space<vmem>>, vector<2x16xf32>
    tpu.vector_store %arg10[%c0_24, %c0_25], %30 {strides = array<i32>} : memref<2x16xf32, #tpu.memory_space<vmem>>, vector<2x16xf32>,
    return
  }
  func.func @transform_0(%arg0: i32) -> (i32, i32) {
    %c0_i32 = arith.constant 0 : i32
    %c0_i32_0 = arith.constant 0 : i32
    return %arg0, %c0_i32 : i32, i32
  }
  func.func @transform_1(%arg0: i32) -> (i32, i32) {
    %c0_i32 = arith.constant 0 : i32
    %c0_i32_0 = arith.constant 0 : i32
    %c0_i32_1 = arith.constant 0 : i32
    return %c0_i32, %c0_i32_0 : i32, i32
  }
  func.func @transform_2(%arg0: i32) -> (i32, i32) {
    %c0_i32 = arith.constant 0 : i32
    %c0_i32_0 = arith.constant 0 : i32
    %c0_i32_1 = arith.constant 0 : i32
    return %c0_i32, %c0_i32_0 : i32, i32
  }
  func.func @transform_3(%arg0: i32) -> (i32, i32) {
    %c0_i32 = arith.constant 0 : i32
    %c0_i32_0 = arith.constant 0 : i32
    %c0_i32_1 = arith.constant 0 : i32
    return %c0_i32, %c0_i32_0 : i32, i32
  }
  func.func @transform_4(%arg0: i32) -> (i32, i32) {
    %c0_i32 = arith.constant 0 : i32
    %c0_i32_0 = arith.constant 0 : i32
    %c0_i32_1 = arith.constant 0 : i32
    return %c0_i32, %c0_i32_0 : i32, i32
  }
  func.func @transform_5(%arg0: i32) -> (i32, i32) {
    %c0_i32 = arith.constant 0 : i32
    %c0_i32_0 = arith.constant 0 : i32
    %c0_i32_1 = arith.constant 0 : i32
    return %c0_i32, %c0_i32_0 : i32, i32
  }
  func.func @transform_6(%arg0: i32) -> (i32, i32) {
    %c0_i32 = arith.constant 0 : i32
    %c0_i32_0 = arith.constant 0 : i32
    %c0_i32_1 = arith.constant 0 : i32
    return %c0_i32, %c0_i32_0 : i32, i32
  }
  func.func @transform_7(%arg0: i32) -> (i32, i32) {
    %c0_i32 = arith.constant 0 : i32
    %c0_i32_0 = arith.constant 0 : i32
    %c0_i32_1 = arith.constant 0 : i32
    return %c0_i32, %c0_i32_0 : i32, i32
  }
  func.func @transform_8(%arg0: i32) -> (i32, i32) {
    %c0_i32 = arith.constant 0 : i32
    %c0_i32_0 = arith.constant 0 : i32
    %c0_i32_1 = arith.constant 0 : i32
    return %c0_i32, %c0_i32_0 : i32, i32
  }
  func.func @transform_9(%arg0: i32) -> (i32, i32) {
    %c0_i32 = arith.constant 0 : i32
    %c0_i32_0 = arith.constant 0 : i32
    return %arg0, %c0_i32 : i32, i32
  }
}

</mosaic_0001>

<bundles_post_ra>
// kernel: tpu_custom_call.1
= control target key start
LH: loop header
LB: loop body
LE: loop exit
PB: predicated region body
PF: predicated region fallthrough
CT: control target
= control target key end

     0   :  { %v642_v3 = vmov 0.0|0.0   ;;  %vm643_vm0 = vmmov 0   ;;  %v644_v6 = vmov 0.0   ;;  %s807_s0 = inlined_call_operand.vmem [shape: f32[2,68], index: 0, kind: input, shape index: {}]   ;;  %s808_s1 = inlined_call_operand.vmem [shape: f32[68,32], index: 1, kind: input, shape index: {}]   ;;  %s809_s2 = inlined_call_operand.vmem [shape: f32[1,32], index: 2, kind: input, shape index: {}]   ;;  %s810_s3 = inlined_call_operand.vmem [shape: f32[32,32], index: 3, kind: input, shape index: {}]   ;;  %s811_s4 = inlined_call_operand.vmem [shape: f32[1,32], index: 4, kind: input, shape index: {}]   ;;  %s812_s5 = inlined_call_operand.vmem [shape: f32[32,20], index: 5, kind: input, shape index: {}]   ;;  %s813_s6 = inlined_call_operand.vmem [shape: f32[1,20], index: 6, kind: input, shape index: {}]   ;;  %s814_s7 = inlined_call_operand.vmem [shape: f32[20,16], index: 7, kind: input, shape index: {}]   ;;  %s815_s8 = inlined_call_operand.vmem [shape: f32[20,16], index: 8, kind: input, shape index: {}]   ;;  %s816_s9 = inlined_call_operand.hbm [shape: f32[2,16], index: 9, kind: output, shape index: {}]  }
   0x1   :  { %v34_v0 = vld [vmem:[%s808_s1] sm:$0xff]  ;;  %v35_v1 = vld [vmem:[%s808_s1 + $0x8] sm:$0xff]  ;;  %v36_v2 = vld [vmem:[%s808_s1 + $0x10] sm:$0xff]  ;;  %580 = vmatprep.subr.bf16.mxu0 %v642_v3  ;;  %592 = vmatprep.subr.bf16.mxu1 %v642_v3 }
   0x2   :  { %v581_v4 = vpack.c.bf16 %v35_v1, %v34_v0  ;;  %v37_v5 = vld [vmem:[%s808_s1 + $0x18] sm:$0xff]  ;;  %537 = vmatprep.mubr.msk.f32.mxu0 %vm643_vm0, %v644_v6  ;;  %548 = vmatprep.mubr.msk.f32.mxu1 %vm643_vm0, %v644_v6  ;;  %v129_v8 = vld [vmem:[%s810_s3] sm:$0xff]  ;;  %v130_v9 = vld [vmem:[%s810_s3 + $0x8] sm:$0xff] }
   0x3   :  { %v584_v7 = vpack.c.bf16 %v37_v5, %v36_v2  ;;  %v38_v10 = vld [vmem:[%s808_s1 + $0x20] sm:$0xff]  ;;  %v39_v11 = vld [vmem:[%s808_s1 + $0x28] sm:$0xff]  ;;  %v593_v12 = vpack.c.bf16 %v130_v9, %v129_v8 }
   0x4   :  { %582 = vmatpush3.bf16.msra.mxu0 %v581_v4 }
   0x5   :  { %583 = vmatprep.subr.bf16.mxu0 %v642_v3 }
   0x6   :  { %14 = vsyncpa [#allocation3], 0  ;;  %594 = vmatpush3.bf16.msra.mxu1 %v593_v12  ;;  %v587_v13 = vpack.c.bf16 %v39_v11, %v38_v10  ;;  %v40_v14 = vld [vmem:[%s808_s1 + $0x30] sm:$0xff]  ;;  %v41_v15 = vld [vmem:[%s808_s1 + $0x38] sm:$0xff]  ;;  %vm54_vm1 = vcmask 1043456   ;;  %vm50_vm2 = vcmask 556032  }
   0x7   :  { %595 = vmatprep.subr.bf16.mxu1 %v642_v3  ;;  %v590_v16 = vpack.c.bf16 %v41_v15, %v40_v14  ;;  %v42_v17 = vld [vmem:[%s808_s1 + $0x40] sm:$0xf]  ;;  %v131_v19 = vld [vmem:[%s810_s3 + $0x10] sm:$0xff]  ;;  %v132_v20 = vld [vmem:[%s810_s3 + $0x18] sm:$0xff]  ;;  %vm140_vm3 = vcmask 261120   ;;  %vm299_vm4 = vcmask 156672  }
   0x8   :  { %585 = vmatpush3.bf16.msra.mxu0 %v584_v7  ;;  %v33_v18 = vld [vmem:[%s807_s0] sm:$0x3]  ;;  %v596_v21 = vpack.c.bf16 %v132_v20, %v131_v19  ;;  %v216_v24 = vld [vmem:[%s812_s5 + $0x8] sm:$0xff]  ;;  %v217_v30 = vld [vmem:[%s812_s5 + $0x10] sm:$0xff]  ;;  %vm309_vm5 = vcmask 162816   ;;  %vm464_vm6 = vcmask 123904  }
   0x9   :  { %586 = vmatprep.subr.bf16.mxu0 %v642_v3  ;;  %v480_v22 = vld [vmem:[%s809_s2] ss:$0 sm:$0xff]  ;;  %v218_v31 = vld [vmem:[%s812_s5 + $0x18] sm:$0xff]  ;;  %v387_v44 = vld [vmem:[%s815_s8 + $0x8] sm:$0xff] }
   0xa   :  { %597 = vmatpush3.bf16.msra.mxu1 %v596_v21  ;;  %v215_v23 = vld [vmem:[%s812_s5] sm:$0xff]  ;;  %v602_v32 = vpack.c.bf16 %v218_v31, %v217_v30  ;;  %v307_v47 = vld [vmem:[%s814_s7 + $0x8] sm:$0xff]  ;;  %v388_v49 = vld [vmem:[%s815_s8 + $0x10] sm:$0xf] }
   0xb   :  { %598 = vmatprep.subr.bf16.mxu1 %v642_v3  ;;  %v599_v28 = vpack.c.bf16 %v216_v24, %v215_v23  ;;  %v483_v33 = vld [vmem:[%s811_s4] ss:$0 sm:$0xff]  ;;  %v308_v50 = vld [vmem:[%s814_s7 + $0x10] sm:$0xf] }
   0xc   :  { %588 = vmatpush3.bf16.msra.mxu0 %v587_v13  ;;  %v485_v38 = vld [vmem:[%s813_s6] ss:$0 sm:$0xff] }
   0xd   :  { %589 = vmatprep.subr.bf16.mxu0 %v642_v3  ;;  %v386_v43 = vld [vmem:[%s815_s8] sm:$0xff]  ;;  %s645_s8 = smov [#allocation2]  }
   0xe   :  { %v306_v45 = vld [vmem:[%s814_s7] sm:$0xff]  ;;  %v608_v46 = vpack.c.bf16 %v387_v44, %v386_v43  ;;  %s472_s14 = sshll.u32 %s645_s8, 4  ;;  %s473_s14 = int_to_ptr.vmem [resolvable:$true] %s472_s14 }
   0xf   :  { %v605_v48 = vpack.c.bf16 %v307_v47, %v306_v45  ;;  %s618_s7 = scalar_lea.vmem %s473_s14, 32  ;;  %p623_p1 = scmp.lt.s32.totalorder %s473_s14, %s473_s14 }
  0x10   :  { %591 = vmatpush3.bf16.msra.mxu0 %v590_v16  ;;  %p619_p0 = scmp.ne.s32.totalorder %s473_s14, %s618_s7  ;;  %p624_p2 = scmp.lt.s32.totalorder %s618_s7, %s618_s7 }
  0x11   :  { %535 = vmatprep.subr.mxu0 %v644_v6 }
  0x12   :  { %p625_p3 = por %p624_p2, %p623_p1 }
  0x14   :  { %536 = vmatpush3.msk.msra.mxu0 %vm54_vm1, %v42_v17  ;;  %p626_p4 = pnand %p625_p3, %p619_p0 }
  0x15   :  { %538 = vmatmul.mubr.msk.f32.vlgmr.msra.gmra.mrb[0].mxu0 %vm50_vm2, %v33_v18  ;;  %607 = vmatprep.subr.bf16.mxu0 %v642_v3 }
  0x16   :  { %577 = vmatprep.mubr.msk.f32.mxu0 %vm643_vm0, %v644_v6  ;;  %609 = vmatpush3.bf16.msra.mxu0 %v608_v46 }
  0x17   :  { %575 = vmatprep.subr.mxu0 %v644_v6 }
  0x1a   :  { %576 = vmatpush3.msk.msra.mxu0 %vm54_vm1, %v388_v49 }
  0xe8   :  { %v124_v25 = vpop.f32.mrb[0].mxu0 }
  0xe9   :  { %v125_v26 = vadd.f32 %v480_v22, %v124_v25  ;;  %v539_v27 = vpop.f32.mrb[1].mxu0 }
  0xeb   :  { %v128_v29 = vmax.f32 %v125_v26, 0.0 }
  0xed   :  { %549 = vmatmul.mubr.msk.f32.vlgmr.msra.gmra.mrb[0].mxu1 %vm140_vm3, %v128_v29 }
  0xee   :  { %600 = vmatpush3.bf16.msra.mxu1 %v599_v28  ;;  %559 = vmatprep.mubr.msk.f32.mxu1 %vm643_vm0, %v644_v6 }
  0xef   :  { %601 = vmatprep.subr.bf16.mxu1 %v642_v3 }
  0xf2   :  { %603 = vmatpush3.bf16.msra.mxu1 %v602_v32 }
  0xf3   :  { %604 = vmatprep.subr.bf16.mxu1 %v642_v3 }
 0x1c0   :  { %v210_v34 = vpop.f32.mrb[0].mxu1 }
 0x1c1   :  { %v211_v35 = vadd.f32 %v483_v33, %v210_v34  ;;  %v550_v36 = vpop.f32.mrb[1].mxu1 }
 0x1c3   :  { %v214_v37 = vmax.f32 %v211_v35, 0.0 }
 0x1c5   :  { %560 = vmatmul.mubr.msk.f32.vlgmr.msra.gmra.mrb[2].mxu1 %vm140_vm3, %v214_v37 }
 0x1c6   :  { %568 = vmatprep.mubr.msk.f32.mxu1 %vm643_vm0, %v644_v6  ;;  %606 = vmatpush3.bf16.msra.mxu1 %v605_v48 }
 0x1c7   :  { %566 = vmatprep.subr.mxu1 %v644_v6 }
 0x1ca   :  { %567 = vmatpush3.msk.msra.mxu1 %vm54_vm1, %v308_v50 }
 0x298   :  { %v295_v39 = vpop.f32.mrb[2].mxu1 }
 0x299   :  { %v296_v40 = vadd.f32 %v485_v38, %v295_v39  ;;  %v561_v41 = vpop.f32.mrb[3].mxu1 }
 0x29b   :  { %v300_v42 = vsel %vm299_vm4, %v296_v40, -inf }
 0x29c   :  { %301 = vmax.xlane.f32.xlu0 %v300_v42 }
 0x329   :  { %v302_v51 = vpop.xlane.xlu0 %301 }
 0x32a   :  { %v303_v52 = vsub.f32 %v296_v40, %v302_v51 }
 0x32c   :  { %v304_v53 = vmul.f32 1.442695, %v303_v52 }
 0x32e   :  { %614 = vpow2.f32 %v304_v53 }
 0x338   :  { %v615_v54 = vpop.eup %614 }
 0x339   :  { %569 = vmatmul.mubr.msk.f32.vlgmr.msra.gmra.mrb[4].mxu1 %vm309_vm5, %v615_v54  ;;  %578 = vmatmul.mubr.msk.f32.vlgmr.msra.gmra.mrb[2].mxu0 %vm309_vm5, %v615_v54 }
 0x40c   :  { %v382_v55 = vpop.f32.mrb[4].mxu1  ;;  %v458_v56 = vpop.f32.mrb[2].mxu0 }
 0x40d   :  { %616 = vrcp.f32 %v458_v56  ;;  %v570_v57 = vpop.f32.mrb[5].mxu1  ;;  %v579_v58 = vpop.f32.mrb[3].mxu0 }
 0x417   :  { %v617_v59 = vpop.eup %616 }
 0x418   :  { %v463_v60 = vmul.f32 %v617_v59, %v382_v55 }
 0x41a   :  { %465 = vst.msk [vmem:[#allocation2] sm:$0x3] %vm464_vm6, %v463_v60 }
 0x41b   :  { %629 = shalt.err (!%p626_p4)
}
 0x41c   :  { %s630_s1 = scalar_lea.hbm %s816_s9, 32 }
 0x41d   :  { %p631_p5 = scmp.ne.s32.totalorder %s816_s9, %s630_s1  ;;  %p634_p6 = scmp.lt.u32.totalorder %s630_s1, %s816_s9 }
 0x41f   :  { %p636_p7 = pnand %p634_p6, %p631_p5 }
 0x421   :  { %639 = shalt.err (!%p636_p7)
}
 0x422   :  { %475 = dma.vmem_to_hbm [thread:$0]  %s473_s14, 32, %s816_s9, [#allocation3]  }
 0x423   :  { %640 = dma.done.wait [#allocation3], 32  }
 0x424   :  { %641 = vsyncadd [#allocation3], 4294967264 }
 0x425   :  { %479 = vsyncpa [#allocation3], 1 }

</bundles_post_ra>
